<compile_context>
chip_gen: v7x
topology: tpu7x:2x2x1
jax: 0.10.0
libtpu: 0.0.40
codegen_flags: <defaults>
</compile_context>

<pallas_src>
import jax
import jax.numpy as jnp
from jax import lax
from jax.experimental import pallas as pl
from jax.experimental.pallas import tpu as pltpu


# ---------------- packed parameter slab layout (one (64, 128) f32 operand) -----
# columns: [0:3) W1^T | [3:18) W2^T | [18:50) W3^T | [50:114) W4^T
#          | 114 b1 | 115 b2 | 116 b3 | 117 b4     (rows used: 15/32/64/2)
_W1_C, _W2_C, _W3_C, _W4_C = 0, 3, 18, 50
_B1_C, _B2_C, _B3_C, _B4_C = 114, 115, 116, 117
_P_ROWS, _P_COLS = 64, 128


def pack_params(params):
    """Pack (w1,b1,...,w4,b4) (weights stored (in,out)) into one (64,128) f32 slab."""
    w1, b1, w2, b2, w3, b3, w4, b4 = params
    p = jnp.zeros((_P_ROWS, _P_COLS), jnp.float32)
    p = p.at[0:15, _W1_C:_W1_C + 3].set(w1.T)
    p = p.at[0:32, _W2_C:_W2_C + 15].set(w2.T)
    p = p.at[0:64, _W3_C:_W3_C + 32].set(w3.T)
    p = p.at[0:2,  _W4_C:_W4_C + 64].set(w4.T)
    p = p.at[0:15, _B1_C].set(b1)
    p = p.at[0:32, _B2_C].set(b2)
    p = p.at[0:64, _B3_C].set(b3)
    p = p.at[0:2,  _B4_C].set(b4)
    return p


# ----------------------------------- kernel ------------------------------------
def _fake_pendu_kernel(lim_ref, in_ref, p_ref, out_ref):
    maxT = lim_ref[0]                                  # SMEM scalars
    maxspeed = lim_ref[1]

    obs0 = in_ref[0:1, :]                              # (1, TB)
    obs1 = in_ref[1:2, :]                              # (1, TB)
    act = jnp.clip(in_ref[2:3, :], -maxT, maxT)        # clip_tensor(act, -maxT, maxT)

    # Layer 1 (in=3): concat folded away; 3 VPU broadcast FMAs instead of a
    # degenerate K=3 MXU matmul.
    w1 = p_ref[0:15, _W1_C:_W1_C + 3]                  # (15, 3)
    b1 = p_ref[0:15, _B1_C:_B1_C + 1]                  # (15, 1)
    h = w1[:, 0:1] * obs0 + w1[:, 1:2] * obs1 + w1[:, 2:3] * act + b1
    h = jnp.maximum(h, 0.0)                            # (15, TB)

    h = jnp.dot(p_ref[0:32, _W2_C:_W2_C + 15], h,
                preferred_element_type=jnp.float32) + p_ref[0:32, _B2_C:_B2_C + 1]
    h = jnp.maximum(h, 0.0)                            # (32, TB)

    h = jnp.dot(p_ref[0:64, _W3_C:_W3_C + 32], h,
                preferred_element_type=jnp.float32) + p_ref[0:64, _B3_C:_B3_C + 1]
    h = jnp.maximum(h, 0.0)                            # (64, TB)

    x = jnp.dot(p_ref[0:2, _W4_C:_W4_C + 64], h,
                preferred_element_type=jnp.float32) + p_ref[0:2, _B4_C:_B4_C + 1]
    # x: (2, TB). Row 0 passes through; row 1 clipped. One (2, TB) store.
    row = lax.broadcasted_iota(jnp.int32, x.shape, 0)
    out_ref[...] = jnp.where(row == 1, jnp.clip(x, -maxspeed, maxspeed), x)


# --------------------------------- wrappers ------------------------------------
def _round_up(x, m):
    return (x + m - 1) // m * m


def _default_batch_tile():
    # 128 MiB VMEM parts (v5e/v6e): fat 32K tiles.  v7x (64 MiB VMEM): cap at 16K
    # so the (64, tb) / (32, tb) f32 intermediates stay well under the limit.
    try:
        vmem = getattr(pltpu.get_tpu_info(), "vmem_capacity_bytes", 0)
        if vmem >= 100 * 1024 * 1024:
            return 32768
    except Exception:
        pass
    return 16384


def _choose_tile(B, batch_tile):
    """Lane tile (multiple of 128, or B itself when B<128) and grid size."""
    if B <= 128:
        return B, 1
    tb_cap = max(128, _round_up(int(batch_tile), 128))
    Bp = _round_up(B, 128)
    # >=2 grid steps whenever possible so v7x's two TensorCores both get work.
    n = max(2, pl.cdiv(Bp, tb_cap))
    tb = min(tb_cap, _round_up(pl.cdiv(Bp, n), 128))
    return tb, pl.cdiv(B, tb)


def fake_pendu_forward_fm(state_fm, packed_params, maxT=2.0, maxspeed=8.0, *,
                          batch_tile=None):
    """Feature-major hot path (zero wrapper-side repack).

    state_fm: (3, B) f32 with rows [obs[:,0], obs[:,1], act] (act unclipped; the
              clip to +/-maxT happens in-kernel).  Returns (2, B) f32.
    maxT / maxspeed: per-call scalars (the module defaults 2*ones / 8*ones are
              uniform, so scalars preserve the semantics).
    """
    # TODO(synk): genuinely per-batch maxT/maxspeed tensors would need two extra
    # slab rows; only the uniform/scalar case used by the module is implemented.
    assert state_fm.ndim == 2 and state_fm.shape[0] == 3
    B = int(state_fm.shape[1])

    if batch_tile is None:
        batch_tile = _default_batch_tile()
    tb, grid = _choose_tile(B, batch_tile)

    lim = jnp.asarray([maxT, maxspeed], jnp.float32).reshape(2)

    flops = 2 * B * (3 * 15 + 15 * 32 + 32 * 64 + 64 * 2)
    bytes_accessed = 4 * (5 * B + _P_ROWS * _P_COLS + 2)

    return pl.pallas_call(
        _fake_pendu_kernel,
        out_shape=jax.ShapeDtypeStruct((2, B), jnp.float32),
        grid=(grid,),
        in_specs=[
            pl.BlockSpec(memory_space=pltpu.MemorySpace.SMEM),     # maxT, maxspeed
            pl.BlockSpec((3, tb), lambda i: (0, i)),               # per-batch slab
            pl.BlockSpec((_P_ROWS, _P_COLS), lambda i: (0, 0)),    # params, resident
        ],
        out_specs=pl.BlockSpec((2, tb), lambda i: (0, i)),
        compiler_params=pltpu.CompilerParams(
            dimension_semantics=("parallel",),
            vmem_limit_bytes=48 * 1024 * 1024,
        ),
        cost_estimate=pl.CostEstimate(
            flops=flops, transcendentals=0, bytes_accessed=bytes_accessed),
    )(lim, state_fm.astype(jnp.float32), packed_params)


def fake_pendu_forward(obs, act, packed_params, maxT=2.0, maxspeed=8.0, *,
                       batch_tile=None):
    """Batch-major convenience wrapper matching the PyTorch signature:
    obs (B,2), act (B,1) -> (B,2).  Costs one fused pack/transpose pass each way;
    prefer fake_pendu_forward_fm for the zero-copy feature-major hot path."""
    state_fm = jnp.concatenate([obs, act], axis=-1).T          # single fused pack
    out = fake_pendu_forward_fm(state_fm, packed_params, maxT, maxspeed,
                                batch_tile=batch_tile)
    return out.T


# ------------------------------ init & reference -------------------------------
def init_params(key):
    """Deterministic init of Linear(3,15), Linear(15,32), Linear(32,64), Linear(64,2).
    Weights stored (in, out) so the reference forward is x @ W + b."""
    dims = [(3, 15), (15, 32), (32, 64), (64, 2)]
    params = []
    for i, (fin, fout) in enumerate(dims):
        kw, kb = jax.random.split(jax.random.fold_in(key, i))
        bound = 1.0 / jnp.sqrt(fin)
        w = jax.random.uniform(kw, (fin, fout), jnp.float32, -bound, bound)
        b = jax.random.uniform(kb, (fout,), jnp.float32, -bound, bound)
        params += [w, b]
    return tuple(params)


def reference_forward(obs, act, params, maxT, maxspeed):
    """Pure-JAX reference mirroring the PyTorch forward (scalar maxT/maxspeed)."""
    w1, b1, w2, b2, w3, b3, w4, b4 = params
    a = jnp.clip(act, -maxT, maxT)
    state = jnp.concatenate([obs, a], axis=-1)
    h = jax.nn.relu(state @ w1 + b1)
    h = jax.nn.relu(h @ w2 + b2)
    h = jax.nn.relu(h @ w3 + b3)
    x = h @ w4 + b4
    xdot = jnp.clip(x[:, 1:], -maxspeed, maxspeed)
    return jnp.concatenate([x[:, 0:1], xdot], axis=1)


if __name__ == "__main__":
    key = jax.random.PRNGKey(0)
    k_obs, k_act, k_param = jax.random.split(key, 3)
    params = init_params(k_param)
    packed = pack_params(params)
    maxT, maxspeed = 2.0, 8.0

    for B in (8, 300):   # tiny batch + a ragged (non-multiple-of-128) batch
        obs = jax.random.normal(jax.random.fold_in(k_obs, B), (B, 2), jnp.float32)
        act = 5.0 * jax.random.normal(jax.random.fold_in(k_act, B), (B, 1), jnp.float32)
        ref = reference_forward(obs, act, params, maxT, maxspeed)

        # Feature-major hot path.
        state_fm = jnp.concatenate([obs, act], axis=-1).T        # (3, B)
        out_fm = jax.block_until_ready(
            fake_pendu_forward_fm(state_fm, packed, maxT, maxspeed))
        assert out_fm.shape == (2, B) and out_fm.dtype == jnp.float32
        assert jnp.allclose(out_fm.T, ref, atol=1e-5, rtol=1e-5), "fm mismatch"

        # Batch-major compatibility wrapper (PyTorch-style signature).
        out_bm = jax.block_until_ready(
            fake_pendu_forward(obs, act, packed, maxT, maxspeed))
        assert out_bm.shape == (B, 2) and out_bm.dtype == jnp.float32
        assert jnp.allclose(out_bm, ref, atol=1e-5, rtol=1e-5), "bm mismatch"

    print("KERNEL_OK")
</pallas_src>

<mosaic_0001>
module attributes {stable_mosaic.version = 11 : i64} {
  func.func @_fake_pendu_kernel(%arg0: i32, %arg1: memref<2xf32, #tpu.memory_space<smem>>, %arg2: memref<3x8xf32, #tpu.memory_space<vmem>>, %arg3: memref<64x128xf32, #tpu.memory_space<vmem>>, %arg4: memref<2x8xf32, #tpu.memory_space<vmem>>) attributes {dimension_semantics = [#tpu.dimension_semantics<parallel>], iteration_bounds = array<i64: 1>, scalar_prefetch = 0 : i64, scratch_operands = 0 : i64, tpu.core_type = #tpu.core_type<tc>, window_params = [{transform_indices = @transform_0, window_bounds = array<i64: 2>}, {transform_indices = @transform_1, window_bounds = array<i64: 3, 8>}, {pipeline_mode = #tpu.pipeline_mode<synchronous>, transform_indices = @transform_2, window_bounds = array<i64: 64, 128>}, {transform_indices = @transform_3, window_bounds = array<i64: 2, 8>}]} {
    %c0 = arith.constant 0 : index
    %0 = memref.load %arg1[%c0] : memref<2xf32, #tpu.memory_space<smem>>
    %c1 = arith.constant 1 : index
    %1 = memref.load %arg1[%c1] : memref<2xf32, #tpu.memory_space<smem>>
    %c0_0 = arith.constant 0 : index
    %c0_1 = arith.constant 0 : index
    %2 = vector.load %arg2[%c0_0, %c0_1] : memref<3x8xf32, #tpu.memory_space<vmem>>, vector<1x8xf32>
    %c1_2 = arith.constant 1 : index
    %c0_3 = arith.constant 0 : index
    %3 = vector.load %arg2[%c1_2, %c0_3] : memref<3x8xf32, #tpu.memory_space<vmem>>, vector<1x8xf32>
    %c2 = arith.constant 2 : index
    %c0_4 = arith.constant 0 : index
    %4 = vector.load %arg2[%c2, %c0_4] : memref<3x8xf32, #tpu.memory_space<vmem>>, vector<1x8xf32>
    %cst = arith.constant 0.000000e+00 : f32
    %5 = arith.subf %cst, %0 : f32
    %6 = vector.broadcast %5 : f32 to vector<1x8xf32>
    %7 = arith.maximumf %6, %4 : vector<1x8xf32>
    %8 = vector.broadcast %0 : f32 to vector<1x8xf32>
    %9 = arith.minimumf %8, %7 : vector<1x8xf32>
    %c0_5 = arith.constant 0 : index
    %c0_6 = arith.constant 0 : index
    %10 = vector.load %arg3[%c0_5, %c0_6] : memref<64x128xf32, #tpu.memory_space<vmem>>, vector<15x3xf32>
    %c0_7 = arith.constant 0 : index
    %c114 = arith.constant 114 : index
    %11 = vector.load %arg3[%c0_7, %c114] : memref<64x128xf32, #tpu.memory_space<vmem>>, vector<15x1xf32>
    %12 = vector.extract_strided_slice %10 {offsets = [0, 0], sizes = [15, 1], strides = [1, 1]} : vector<15x3xf32> to vector<15x1xf32>
    %13 = vector.broadcast %12 : vector<15x1xf32> to vector<15x8xf32>
    %14 = vector.broadcast %2 : vector<1x8xf32> to vector<15x8xf32>
    %15 = arith.mulf %13, %14 : vector<15x8xf32>
    %16 = vector.extract_strided_slice %10 {offsets = [0, 1], sizes = [15, 1], strides = [1, 1]} : vector<15x3xf32> to vector<15x1xf32>
    %17 = vector.broadcast %16 : vector<15x1xf32> to vector<15x8xf32>
    %18 = vector.broadcast %3 : vector<1x8xf32> to vector<15x8xf32>
    %19 = arith.mulf %17, %18 : vector<15x8xf32>
    %20 = arith.addf %15, %19 : vector<15x8xf32>
    %21 = vector.extract_strided_slice %10 {offsets = [0, 2], sizes = [15, 1], strides = [1, 1]} : vector<15x3xf32> to vector<15x1xf32>
    %22 = vector.broadcast %21 : vector<15x1xf32> to vector<15x8xf32>
    %23 = vector.broadcast %9 : vector<1x8xf32> to vector<15x8xf32>
    %24 = arith.mulf %22, %23 : vector<15x8xf32>
    %25 = arith.addf %20, %24 : vector<15x8xf32>
    %26 = vector.broadcast %11 : vector<15x1xf32> to vector<15x8xf32>
    %27 = arith.addf %25, %26 : vector<15x8xf32>
    %cst_8 = arith.constant 0.000000e+00 : f32
    %28 = vector.broadcast %cst_8 : f32 to vector<15x8xf32>
    %29 = arith.maximumf %27, %28 : vector<15x8xf32>
    %c0_9 = arith.constant 0 : index
    %c3 = arith.constant 3 : index
    %30 = vector.load %arg3[%c0_9, %c3] : memref<64x128xf32, #tpu.memory_space<vmem>>, vector<32x15xf32>
    %cst_10 = arith.constant dense<0.000000e+00> : vector<32x8xf32>
    %31 = tpu.matmul %30, %29, %cst_10 {dimension_numbers = #tpu.dot_dimension_numbers<[1], [0], [0], [1], [0, 0, 1, 1], [], []>} : vector<32x15xf32>, vector<15x8xf32>, vector<32x8xf32> -> vector<32x8xf32>
    %c0_11 = arith.constant 0 : index
    %c115 = arith.constant 115 : index
    %32 = vector.load %arg3[%c0_11, %c115] : memref<64x128xf32, #tpu.memory_space<vmem>>, vector<32x1xf32>
    %33 = vector.broadcast %32 : vector<32x1xf32> to vector<32x8xf32>
    %34 = arith.addf %31, %33 : vector<32x8xf32>
    %cst_12 = arith.constant 0.000000e+00 : f32
    %35 = vector.broadcast %cst_12 : f32 to vector<32x8xf32>
    %36 = arith.maximumf %34, %35 : vector<32x8xf32>
    %c0_13 = arith.constant 0 : index
    %c18 = arith.constant 18 : index
    %37 = vector.load %arg3[%c0_13, %c18] : memref<64x128xf32, #tpu.memory_space<vmem>>, vector<64x32xf32>
    %cst_14 = arith.constant dense<0.000000e+00> : vector<64x8xf32>
    %38 = tpu.matmul %37, %36, %cst_14 {dimension_numbers = #tpu.dot_dimension_numbers<[1], [0], [0], [1], [0, 0, 1, 1], [], []>} : vector<64x32xf32>, vector<32x8xf32>, vector<64x8xf32> -> vector<64x8xf32>
    %c0_15 = arith.constant 0 : index
    %c116 = arith.constant 116 : index
    %39 = vector.load %arg3[%c0_15, %c116] : memref<64x128xf32, #tpu.memory_space<vmem>>, vector<64x1xf32>
    %40 = vector.broadcast %39 : vector<64x1xf32> to vector<64x8xf32>
    %41 = arith.addf %38, %40 : vector<64x8xf32>
    %cst_16 = arith.constant 0.000000e+00 : f32
    %42 = vector.broadcast %cst_16 : f32 to vector<64x8xf32>
    %43 = arith.maximumf %41, %42 : vector<64x8xf32>
    %c0_17 = arith.constant 0 : index
    %c50 = arith.constant 50 : index
    %44 = vector.load %arg3[%c0_17, %c50] : memref<64x128xf32, #tpu.memory_space<vmem>>, vector<2x64xf32>
    %cst_18 = arith.constant dense<0.000000e+00> : vector<2x8xf32>
    %45 = tpu.matmul %44, %43, %cst_18 {dimension_numbers = #tpu.dot_dimension_numbers<[1], [0], [0], [1], [0, 0, 1, 1], [], []>} : vector<2x64xf32>, vector<64x8xf32>, vector<2x8xf32> -> vector<2x8xf32>
    %c0_19 = arith.constant 0 : index
    %c117 = arith.constant 117 : index
    %46 = vector.load %arg3[%c0_19, %c117] : memref<64x128xf32, #tpu.memory_space<vmem>>, vector<2x1xf32>
    %47 = vector.broadcast %46 : vector<2x1xf32> to vector<2x8xf32>
    %48 = arith.addf %45, %47 : vector<2x8xf32>
    %49 = tpu.iota {dimensions = array<i32: 0>} : vector<2x8xi32>
    %c1_i32 = arith.constant 1 : i32
    %50 = vector.broadcast %c1_i32 : i32 to vector<2x8xi32>
    %51 = arith.cmpi eq, %49, %50 : vector<2x8xi32>
    %cst_20 = arith.constant 0.000000e+00 : f32
    %52 = arith.subf %cst_20, %1 : f32
    %53 = vector.broadcast %52 : f32 to vector<2x8xf32>
    %54 = arith.maximumf %53, %48 : vector<2x8xf32>
    %55 = vector.broadcast %1 : f32 to vector<2x8xf32>
    %56 = arith.minimumf %55, %54 : vector<2x8xf32>
    %57 = arith.select %51, %56, %48 : vector<2x8xi1>, vector<2x8xf32>
    %c0_21 = arith.constant 0 : index
    %c0_22 = arith.constant 0 : index
    %58 = vector.load %arg4[%c0_21, %c0_22] : memref<2x8xf32, #tpu.memory_space<vmem>>, vector<2x8xf32>
    tpu.vector_store %arg4[%c0_21, %c0_22], %57 {strides = array<i32>} : memref<2x8xf32, #tpu.memory_space<vmem>>, vector<2x8xf32>,
    return
  }
  func.func @transform_0(%arg0: i32) -> i32 {
    %c0_i32 = arith.constant 0 : i32
    %c0_i32_0 = arith.constant 0 : i32
    return %c0_i32 : i32
  }
  func.func @transform_1(%arg0: i32) -> (i32, i32) {
    %c0_i32 = arith.constant 0 : i32
    %c0_i32_0 = arith.constant 0 : i32
    return %c0_i32, %arg0 : i32, i32
  }
  func.func @transform_2(%arg0: i32) -> (i32, i32) {
    %c0_i32 = arith.constant 0 : i32
    %c0_i32_0 = arith.constant 0 : i32
    %c0_i32_1 = arith.constant 0 : i32
    return %c0_i32, %c0_i32_0 : i32, i32
  }
  func.func @transform_3(%arg0: i32) -> (i32, i32) {
    %c0_i32 = arith.constant 0 : i32
    %c0_i32_0 = arith.constant 0 : i32
    return %c0_i32, %arg0 : i32, i32
  }
}

</mosaic_0001>

<bundles_post_ra>
// kernel: tpu_custom_call.1
= control target key start
LH: loop header
LB: loop body
LE: loop exit
PB: predicated region body
PF: predicated region fallthrough
CT: control target
= control target key end

     0   :  { %8 = vsyncpa [#allocation5], 0  ;;  %s940_s0 = inlined_call_operand.hbm [shape: f32[2], index: 0, kind: input, shape index: {}]   ;;  %s941_s1 = inlined_call_operand.hbm [shape: f32[3,8], index: 1, kind: input, shape index: {}]   ;;  %s942_s2 = inlined_call_operand.hbm [shape: f32[64,128], index: 2, kind: input, shape index: {}]   ;;  %s943_s3 = inlined_call_operand.hbm [shape: f32[2,8], index: 3, kind: output, shape index: {}]  }
   0x1   :  { %9 = vsyncpa [#allocation3], 0 }
   0x2   :  { %10 = vsyncpa [#allocation8], 0 }
   0x3   :  { %11 = vsyncpa [#allocation4], 0  ;;  %s712_s14 = scalar_lea.hbm %s940_s0, 16 }
   0x4   :  { %p713_p0 = scmp.ne.s32.totalorder %s940_s0, %s712_s14  ;;  %p716_p1 = scmp.lt.u32.totalorder %s712_s14, %s940_s0 }
   0x6   :  { %p718_p2 = pnand %p716_p1, %p713_p0 }
   0x8   :  { %721 = shalt.err (!%p718_p2)
}
   0x9   :  { %s796_s19 = smov [#allocation2]   ;;  %s797_s22 = smov [#allocation6]  }
   0xa   :  { %19 = dma.hbm_to_smem %s940_s0, 16, %s796_s19, [#allocation5]  }
   0xb   :  { %s26_s23 = sshll.u32 %s797_s22, 4  ;;  %s798_s24 = smov [#allocation7]   ;;  %s27_s23 = int_to_ptr.vmem [resolvable:$true] %s26_s23 }
   0xc   :  { %s35_s25 = sshll.u32 %s798_s24, 4  ;;  %s722_s28 = scalar_lea.hbm %s941_s1, 64  ;;  %s36_s25 = int_to_ptr.vmem [resolvable:$true] %s35_s25 }
   0xd   :  { %p723_p3 = scmp.ne.s32.totalorder %s941_s1, %s722_s28  ;;  %p726_p4 = scmp.lt.u32.totalorder %s722_s28, %s941_s1 }
   0xf   :  { %p728_p5 = pnand %p726_p4, %p723_p3 }
  0x11   :  { %731 = shalt.err (!%p728_p5)
}
  0x12   :  { %s732_s0 = scalar_lea.vmem %s27_s23, 64  ;;  %p737_p7 = scmp.lt.s32.totalorder %s27_s23, %s27_s23 }
  0x13   :  { %p733_p6 = scmp.ne.s32.totalorder %s27_s23, %s732_s0  ;;  %p738_p8 = scmp.lt.s32.totalorder %s732_s0, %s732_s0 }
  0x15   :  { %p739_p9 = por %p738_p8, %p737_p7 }
  0x17   :  { %p740_p10 = pnand %p739_p9, %p733_p6 }
  0x19   :  { %743 = shalt.err (!%p740_p10)
}
  0x1a   :  { %29 = dma.hbm_to_vmem [thread:$0]  %s941_s1, 64, %s27_s23, [#allocation3]  }
  0x1b   :  { %s744_s10 = scalar_lea.hbm %s942_s2, 1024 }
  0x1c   :  { %p745_p11 = scmp.ne.s32.totalorder %s942_s2, %s744_s10  ;;  %p748_p12 = scmp.lt.u32.totalorder %s744_s10, %s942_s2 }
  0x1e   :  { %p750_p13 = pnand %p748_p12, %p745_p11 }
  0x20   :  { %753 = shalt.err (!%p750_p13)
}
  0x21   :  { %s754_s15 = scalar_lea.vmem %s36_s25, 1024  ;;  %p759_p1 = scmp.lt.s32.totalorder %s36_s25, %s36_s25 }
  0x22   :  { %p755_p0 = scmp.ne.s32.totalorder %s36_s25, %s754_s15  ;;  %p760_p2 = scmp.lt.s32.totalorder %s754_s15, %s754_s15 }
  0x24   :  { %p761_p3 = por %p760_p2, %p759_p1 }
  0x26   :  { %p762_p4 = pnand %p761_p3, %p755_p0 }
  0x28   :  { %765 = shalt.err (!%p762_p4)
}
  0x29   :  { %s799_s1 = smov 128   ;;  %s800_s16 = smov 8  }
  0x2a   :  { %41 = dma.hbm_to_vmem [thread:$0]  %s942_s2, 1024, %s36_s25, [#allocation8], %s799_s1, %s799_s1, %s800_s16  }
  0x2b   :  { %788 = dma.done.wait [#allocation5], 16  }
  0x2c   :  { %789 = vsyncadd [#allocation5], 4294967280 }
  0x2d   :  { %790 = dma.done.wait [#allocation3], 64  }
  0x2e   :  { %791 = vsyncadd [#allocation3], 4294967232 }
  0x2f   :  { %792 = dma.done.wait [#allocation8], 1024  }
  0x30   :  { %793 = vsyncadd [#allocation8], 4294966272 }
  0x31   :  { %51 = sfence }
  0x32   :  { %v872_v0 = vld [vmem:[#allocation7] sm:$0xff]  ;;  %v801_v1 = vmov 1   ;;  %v802_v2 = vmov 0   ;;  %v63_v3 = vld [vmem:[#allocation7 + $0x8] sm:$0x7f]  ;;  %v803_v4 = vmov 2   ;;  %v104_v14 = vlaneseq }
  0x33   :  { %701 = vset.pattern.permute.xlu1 %v801_v1  ;;  %700 = vset.pattern.permute.xlu0 %v802_v2  ;;  %v804_v5 = vmov 114   ;;  %v878_v6 = vld [vmem:[#allocation7 + $0x10] sm:$0xff]  ;;  %s805_s2 = smov 125   ;;  %v882_v7 = vld [vmem:[#allocation7 + $0x8] sm:$0xff]  ;;  %v885_v8 = vld [vmem:[#allocation7 + $0x18] sm:$0xff]  ;;  %v806_v9 = vmov 115  }
  0x34   :  { %81 = vperm.xlu1 %701, %v872_v0   ;;  %66 = vperm.xlu0 %700, %v872_v0   ;;  %s807_s19 = smov 110   ;;  %v896_v10 = vld [vmem:[#allocation7 + $0x20] sm:$0xff]  ;;  %v898_v11 = vld [vmem:[#allocation7 + $0x28] sm:$0xff]  ;;  %v902_v12 = vld [vmem:[#allocation7 + $0x30] sm:$0xff]  ;;  %s52_s20 = sld [smem:[#allocation2]]  ;;  %v908_v17 = vshrl.u32 %v104_v14, 7 }
  0x35   :  { %v904_v13 = vld [vmem:[#allocation7 + $0x38] sm:$0xff]  ;;  %vm165_vm0 = vcmask 1046528   ;;  %vm156_vm1 = vcmask 121856   ;;  %vm808_vm2 = vmmov 1   ;;  %vm322_vm4 = vcmask 261120   ;;  %s810_s22 = smov 78  }
  0x36   :  { %v56_v15 = vld [vmem:[#allocation6 + $0x2] sm:$0x1]  ;;  %v106_v22 = vsub.s32 0, %v908_v17  ;;  %v563_v24 = vld [vmem:[#allocation6 + $0x1] ss:$0 sm:$0xff]  ;;  %vm655_vm3 = vmpackc.low %vm165_vm0, %vm808_vm2  ;;  %v809_v55 = vmov 116  }
  0x37   :  { %v562_v25 = vld [vmem:[#allocation6] ss:$0 sm:$0xff]  ;;  %v452_v56 = vld [vmem:[#allocation7] sm:$0x3]  ;;  %vm812_vm5 = vmmov 0   ;;  %vm460_vm6 = vcmask 523264  }
  0x38   :  { %85 = vperm.xlu1 %701, %v63_v3   ;;  %71 = vperm.xlu0 %700, %v63_v3   ;;  %s561_s23 = sld [smem:[#allocation2 + $0x1]]  ;;  %s815_s25 = smov [#allocation9]   ;;  %vm535_vm7 = vcmp.eq.s32.totalorder %v908_v17, 1  ;;  %vm542_vm8 = vcmask 58368  }
  0x39   :  { %s550_s26 = sshll.u32 %s815_s25, 4  ;;  %s551_s26 = int_to_ptr.vmem [resolvable:$true] %s550_s26 }
  0x3a   :  { %s57_s21 = ssub.f32 0.0, %s52_s20  ;;  %v60_v19 = vstv %s52_s20  ;;  %s766_s27 = scalar_lea.vmem %s551_s26, 32 }
  0x3b   :  { %p767_p5 = scmp.ne.s32.totalorder %s551_s26, %s766_s27  ;;  %p771_p6 = scmp.lt.s32.totalorder %s551_s26, %s551_s26 }
  0x3c   :  { %703 = vset.pattern.permute.xlu1 %v803_v4  ;;  %702 = vset.pattern.permute.xlu0 %v803_v4  ;;  %v58_v16 = vstv %s57_s21  ;;  %p772_p7 = scmp.lt.s32.totalorder %s766_s27, %s766_s27 }
  0x3d   :  { %101 = vperm.xlu1 %703, %v63_v3   ;;  %97 = vperm.xlu0 %702, %v872_v0   ;;  %v59_v18 = vmax.f32 %v58_v16, %v56_v15  ;;  %v811_v16 = vmov 0.0|0.0  }
  0x3e   :  { %s536_s24 = ssub.f32 0.0, %s561_s23  ;;  %p773_p8 = por %p772_p7, %p771_p6 }
  0x3f   :  { %v61_v23 = vmin.f32 %v60_v19, %v59_v18  ;;  %v813_v18 = vmov 0.0   ;;  %v814_v19 = vmov 117  }
  0x40   :  { %p774_p9 = pnand %p773_p8, %p767_p5 }
  0x41   :  { %704 = vset.pattern.permute.xlu1 %v804_v5  ;;  %705 = vset.pattern.permute.xlu0 %v804_v5  ;;  %v107_v28 = vrot.slane %v61_v23, %v106_v22 }
  0x42   :  { %113 = vperm.xlu1 %704, %v872_v0   ;;  %117 = vperm.xlu0 %705, %v63_v3  }
  0x46   :  { %148 = vrot.lane.b32.xlu1 %v872_v0, %s805_s2  ;;  %152 = vrot.lane.b32.xlu0 %v878_v6, %s805_s2 }
  0x47   :  { %707 = vset.pattern.permute.xlu1 %v806_v9  ;;  %706 = vset.pattern.permute.xlu0 %v806_v9 }
  0x4a   :  { %150 = vrot.lane.b32.xlu1 %v882_v7, %s805_s2  ;;  %130 = vperm.xlu0 %706, %v872_v0  }
  0x4e   :  { %154 = vrot.lane.b32.xlu1 %v885_v8, %s805_s2  ;;  %145 = vperm.xlu0 %706, %v885_v8  }
  0x52   :  { %135 = vperm.xlu1 %707, %v882_v7   ;;  %308 = vrot.lane.b32.xlu0 %v882_v7, %s807_s19 }
  0x53   :  { %709 = vset.pattern.permute.xlu0 %v809_v55 }
  0x56   :  { %140 = vperm.xlu1 %707, %v878_v6   ;;  %312 = vrot.lane.b32.xlu0 %v885_v8, %s807_s19 }
  0x5a   :  { %306 = vrot.lane.b32.xlu1 %v872_v0, %s807_s19  ;;  %316 = vrot.lane.b32.xlu0 %v898_v11, %s807_s19 }
  0x5b   :  { %708 = vset.pattern.permute.xlu1 %v809_v55 }
  0x5e   :  { %310 = vrot.lane.b32.xlu1 %v878_v6, %s807_s19  ;;  %320 = vrot.lane.b32.xlu0 %v904_v13, %s807_s19 }
  0x62   :  { %314 = vrot.lane.b32.xlu1 %v896_v10, %s807_s19  ;;  %273 = vperm.xlu0 %709, %v882_v7  }
  0x66   :  { %318 = vrot.lane.b32.xlu1 %v902_v12, %s807_s19  ;;  %288 = vperm.xlu0 %709, %v896_v10  }
  0x6a   :  { %268 = vperm.xlu1 %708, %v872_v0   ;;  %298 = vperm.xlu0 %709, %v902_v12  }
  0x6e   :  { %278 = vperm.xlu1 %708, %v878_v6   ;;  %458 = vrot.lane.b32.xlu0 %v452_v56, %s810_s22 }
  0x6f   :  { %711 = vset.pattern.permute.xlu0 %v814_v19 }
  0x72   :  { %283 = vperm.xlu1 %708, %v885_v8  }
  0x76   :  { %293 = vperm.xlu1 %708, %v898_v11  }
  0x7a   :  { %303 = vperm.xlu1 %708, %v904_v13  }
  0x7e   :  { %710 = vset.pattern.permute.xlu1 %v814_v19 }
  0x7f   :  { %455 = vperm.xlu1 %710, %v452_v56  }
  0xb3   :  { %v82_v20 = vpop.permute.xlu1 %81  ;;  %v67_v21 = vpop.permute.xlu0 %66 }
  0xb4   :  { %v92_v29 = vmul.f32 %v563_v24, %v82_v20  ;;  %v78_v30 = vmul.f32 %v562_v25, %v67_v21 }
  0xb6   :  { %v94_v35 = vadd.f32 %v92_v29, %v78_v30 }
  0xb7   :  { %v86_v26 = vpop.permute.xlu1 %85  ;;  %v72_v27 = vpop.permute.xlu0 %71 }
  0xb8   :  { %v93_v31 = vmul.f32 %v563_v24, %v86_v26  ;;  %v79_v32 = vmul.f32 %v562_v25, %v72_v27 }
  0xba   :  { %v95_v36 = vadd.f32 %v93_v31, %v79_v32 }
  0xbc   :  { %v102_v33 = vpop.permute.xlu1 %101  ;;  %v98_v34 = vpop.permute.xlu0 %97 }
  0xbd   :  { %v109_v37 = vmul.f32 %v107_v28, %v102_v33  ;;  %v108_v38 = vmul.f32 %v107_v28, %v98_v34 }
  0xbf   :  { %v110_v39 = vadd.f32 %v108_v38, %v94_v35  ;;  %v111_v40 = vadd.f32 %v109_v37, %v95_v36 }
  0xc1   :  { %v114_v41 = vpop.permute.xlu1 %113  ;;  %v118_v42 = vpop.permute.xlu0 %117 }
  0xc2   :  { %v120_v43 = vadd.f32 %v114_v41, %v110_v39  ;;  %v121_v44 = vadd.f32 %v118_v42, %v111_v40 }
  0xc4   :  { %v122_v45 = vmax.f32 %v120_v43, 0.0  ;;  %v123_v46 = vmax.f32 %v121_v44, 0.0 }
  0xc5   :  { %v149_v47 = vpop.permute.xlu1 %148  ;;  %v153_v50 = vpop.permute.xlu0 %152 }
  0xc6   :  { %v654_v48 = vpack.c.bf16 %v123_v46, %v122_v45  ;;  %609 = vmatprep.mubr.msk.f32.mxu0 %vm156_vm1, %v149_v47 }
  0xc8   :  { %656 = vmatprep.subr.msk.bf16.mxu0 %vm655_vm3, %v654_v48 }
  0xc9   :  { %659 = vmatpush3.bf16.msk.msra.mxu0 %vm655_vm3, %v654_v48  ;;  %v151_v49 = vpop.permute.xlu1 %150  ;;  %v131_v57 = vpop.permute.xlu0 %130 }
  0xca   :  { %668 = vmatprep.subr.bf16.mxu0 %v811_v16 }
  0xcc   :  { %610 = vmatmul.mubr.msk.f32.vlgmr.msra.gmra.mrb[0].mxu0 %vm156_vm1, %v151_v49 }
  0xcd   :  { %v155_v51 = vpop.permute.xlu1 %154  ;;  %612 = vmatprep.mubr.msk.f32.mxu0 %vm156_vm1, %v153_v50  ;;  %v146_v63 = vpop.permute.xlu0 %145 }
  0xd0   :  { %613 = vmatmul.mubr.msk.f32.gmra.mrb[2].mxu0 %vm156_vm1, %v155_v51 }
  0xd1   :  { %v136_v52 = vpop.permute.xlu1 %135  ;;  %v309_v7 = vpop.permute.xlu0 %308  ;;  %651 = vmatprep.mubr.msk.f32.mxu0 %vm812_vm5, %v813_v18 }
  0xd5   :  { %v141_v53 = vpop.permute.xlu1 %140  ;;  %v313_v11 = vpop.permute.xlu0 %312 }
  0xd9   :  { %v307_v54 = vpop.permute.xlu1 %306  ;;  %v317_v13 = vpop.permute.xlu0 %316 }
  0xda   :  { %623 = vmatprep.mubr.msk.f32.mxu1 %vm322_vm4, %v307_v54 }
  0xdd   :  { %v311_v10 = vpop.permute.xlu1 %310  ;;  %v321_v15 = vpop.permute.xlu0 %320 }
  0xe1   :  { %v315_v12 = vpop.permute.xlu1 %314  ;;  %v274_v22 = vpop.permute.xlu0 %273 }
  0xe5   :  { %v319_v14 = vpop.permute.xlu1 %318  ;;  %v289_v36 = vpop.permute.xlu0 %288 }
  0xe9   :  { %v269_v20 = vpop.permute.xlu1 %268  ;;  %v299_v48 = vpop.permute.xlu0 %298 }
  0xed   :  { %v279_v21 = vpop.permute.xlu1 %278  ;;  %v459_v56 = vpop.permute.xlu0 %458 }
  0xf1   :  { %v284_v23 = vpop.permute.xlu1 %283 }
  0xf5   :  { %v294_v33 = vpop.permute.xlu1 %293 }
  0xf9   :  { %v304_v45 = vpop.permute.xlu1 %303 }
 0x19f   :  { %v611_v58 = vpop.f32.mrb[0].mxu0 }
 0x1a0   :  { %v241_v59 = vadd.f32 %v611_v58, %v136_v52  ;;  %v235_v60 = vpop.f32.mrb[1].mxu0 }
 0x1a1   :  { %v236_v61 = vadd.f32 %v235_v60, %v131_v57  ;;  %v456_v57 = vpop.permute.xlu1 %455 }
 0x1a2   :  { %v255_v62 = vmax.f32 %v241_v59, 0.0  ;;  %v537_v59 = vstv %s536_s24 }
 0x1a3   :  { %v254_v0 = vmax.f32 %v236_v61, 0.0  ;;  %v614_v1 = vpop.f32.mrb[2].mxu0 }
 0x1a4   :  { %v251_v2 = vadd.f32 %v614_v1, %v146_v63  ;;  %v245_v3 = vpop.f32.mrb[3].mxu0 }
 0x1a5   :  { %v246_v4 = vadd.f32 %v245_v3, %v141_v53  ;;  %v660_v5 = vpack.c.bf16 %v255_v62, %v254_v0  ;;  %v539_v62 = vstv %s561_s23 }
 0x1a6   :  { %v257_v6 = vmax.f32 %v251_v2, 0.0 }
 0x1a7   :  { %v256_v8 = vmax.f32 %v246_v4, 0.0  ;;  %661 = vmatprep.subr.bf16.mxu1 %v660_v5 }
 0x1a8   :  { %663 = vmatpush3.bf16.msra.mxu1 %v660_v5 }
 0x1a9   :  { %v664_v9 = vpack.c.bf16 %v257_v6, %v256_v8 }
 0x1ab   :  { %665 = vmatprep.subr.bf16.mxu1 %v664_v9 }
 0x1ac   :  { %667 = vmatpush3.bf16.msra.mxu1 %v664_v9 }
 0x1af   :  { %624 = vmatmul.mubr.msk.f32.vlgmr.msra.gmra.mrb[0].mxu1 %vm322_vm4, %v309_v7 }
 0x1b0   :  { %626 = vmatprep.mubr.msk.f32.mxu1 %vm322_vm4, %v311_v10 }
 0x1b3   :  { %627 = vmatmul.mubr.msk.f32.gmra.mrb[2].mxu1 %vm322_vm4, %v313_v11 }
 0x1b4   :  { %629 = vmatprep.mubr.msk.f32.mxu1 %vm322_vm4, %v315_v12 }
 0x1b7   :  { %630 = vmatmul.mubr.msk.f32.gmra.mrb[4].mxu1 %vm322_vm4, %v317_v13 }
 0x1b8   :  { %632 = vmatprep.mubr.msk.f32.mxu1 %vm322_vm4, %v319_v14 }
 0x1bb   :  { %633 = vmatmul.mubr.msk.f32.gmra.mrb[6].mxu1 %vm322_vm4, %v321_v15 }
 0x282   :  { %v625_v24 = vpop.f32.mrb[0].mxu1 }
 0x283   :  { %v411_v25 = vadd.f32 %v625_v24, %v274_v22  ;;  %v405_v26 = vpop.f32.mrb[1].mxu1 }
 0x284   :  { %v406_v27 = vadd.f32 %v405_v26, %v269_v20 }
 0x285   :  { %v445_v28 = vmax.f32 %v411_v25, 0.0 }
 0x286   :  { %v444_v29 = vmax.f32 %v406_v27, 0.0  ;;  %v628_v30 = vpop.f32.mrb[2].mxu1 }
 0x287   :  { %v421_v31 = vadd.f32 %v628_v30, %v284_v23  ;;  %v415_v32 = vpop.f32.mrb[3].mxu1 }
 0x288   :  { %v669_v34 = vpack.c.bf16 %v445_v28, %v444_v29  ;;  %v416_v35 = vadd.f32 %v415_v32, %v279_v21 }
 0x289   :  { %v447_v37 = vmax.f32 %v421_v31, 0.0 }
 0x28a   :  { %v446_v38 = vmax.f32 %v416_v35, 0.0  ;;  %v631_v39 = vpop.f32.mrb[4].mxu1  ;;  %670 = vmatpush3.bf16.msra.mxu0 %v669_v34 }
 0x28b   :  { %v431_v40 = vadd.f32 %v631_v39, %v294_v33  ;;  %v425_v41 = vpop.f32.mrb[5].mxu1  ;;  %671 = vmatprep.subr.bf16.mxu0 %v811_v16 }
 0x28c   :  { %v672_v42 = vpack.c.bf16 %v447_v37, %v446_v38  ;;  %v426_v43 = vadd.f32 %v425_v41, %v289_v36 }
 0x28d   :  { %v449_v44 = vmax.f32 %v431_v40, 0.0 }
 0x28e   :  { %v448_v46 = vmax.f32 %v426_v43, 0.0  ;;  %v634_v47 = vpop.f32.mrb[6].mxu1  ;;  %673 = vmatpush3.bf16.msra.mxu0 %v672_v42 }
 0x28f   :  { %v441_v49 = vadd.f32 %v634_v47, %v304_v45  ;;  %v435_v50 = vpop.f32.mrb[7].mxu1  ;;  %674 = vmatprep.subr.bf16.mxu0 %v811_v16 }
 0x290   :  { %v675_v51 = vpack.c.bf16 %v449_v44, %v448_v46  ;;  %v436_v52 = vadd.f32 %v435_v50, %v299_v48 }
 0x291   :  { %v451_v53 = vmax.f32 %v441_v49, 0.0 }
 0x292   :  { %v450_v54 = vmax.f32 %v436_v52, 0.0  ;;  %676 = vmatpush3.bf16.msra.mxu0 %v675_v51 }
 0x293   :  { %677 = vmatprep.subr.bf16.mxu0 %v811_v16 }
 0x294   :  { %v678_v55 = vpack.c.bf16 %v451_v53, %v450_v54 }
 0x296   :  { %679 = vmatpush3.bf16.msra.mxu0 %v678_v55 }
 0x299   :  { %652 = vmatmul.mubr.msk.f32.vlgmr.msra.gmra.mrb[4].mxu0 %vm460_vm6, %v459_v56 }
 0x36c   :  { %v529_v58 = vpop.f32.mrb[4].mxu0 }
 0x36d   :  { %v530_v60 = vadd.f32 %v529_v58, %v456_v57  ;;  %v653_v61 = vpop.f32.mrb[5].mxu0 }
 0x36f   :  { %v538_v63 = vmax.f32 %v537_v59, %v530_v60 }
 0x371   :  { %v540_v0 = vmin.f32 %v539_v62, %v538_v63 }
 0x373   :  { %v541_v1 = vsel %vm535_vm7, %v540_v0, %v530_v60 }
 0x374   :  { %543 = vst.msk [vmem:[#allocation9] sm:$0x3] %vm542_vm8, %v541_v1 }
 0x375   :  { %777 = shalt.err (!%p774_p9)
}
 0x376   :  { %s778_s30 = scalar_lea.hbm %s943_s3, 32 }
 0x377   :  { %p779_p10 = scmp.ne.s32.totalorder %s943_s3, %s778_s30  ;;  %p782_p11 = scmp.lt.u32.totalorder %s778_s30, %s943_s3 }
 0x379   :  { %p784_p12 = pnand %p782_p11, %p779_p10 }
 0x37b   :  { %787 = shalt.err (!%p784_p12)
}
 0x37c   :  { %553 = dma.vmem_to_hbm [thread:$0]  %s551_s26, 32, %s943_s3, [#allocation4]  }
 0x37d   :  { %794 = dma.done.wait [#allocation4], 32  }
 0x37e   :  { %795 = vsyncadd [#allocation4], 4294967264 }
 0x37f   :  { %557 = vsyncpa [#allocation3], 1 }
 0x380   :  { %558 = vsyncpa [#allocation8], 1 }
 0x381   :  { %559 = vsyncpa [#allocation4], 1 }
 0x382   :  { %560 = vsyncpa [#allocation5], 1 }

</bundles_post_ra>
